<compile_context>
chip_gen: v6e
topology: v6e:2x2x1
jax: 0.10.0
libtpu: 0.0.40
codegen_flags: <defaults>
</compile_context>

<pallas_src>
import jax
import jax.numpy as jnp
from jax.experimental import pallas as pl
from jax.experimental.pallas import tpu as pltpu

_LANES = 128  # TPU lane width; pad obj_num up to this for lane-dense stores.


def _schedule_kernel(fermi_ref, se_ref, out_ref):
    # fermi_ref: SMEM (1,) f32  -> precomputed Fermi interpolation factor
    # se_ref:    VMEM (2, Npad) -> row 0 = c_start, row 1 = c_end
    # out_ref:   VMEM (1, Npad)
    f = fermi_ref[0]
    s = se_ref[0:1, :]
    e = se_ref[1:2, :]
    out_ref[...] = e + (s - e) * f   # pure VPU fma, broadcast scalar f


@jax.jit
def weight_scheduler_forward(step, c_start, c_end, c_mean, c_width):
    """Pallas equivalent of WeightScheduler.forward(step).

    Args:
      step:    scalar (traced) current training step.
      c_start: (obj_num,) float32 initial objective weights.
      c_end:   (obj_num,) float32 final objective weights.
      c_mean:  scalar float32, Fermi mean (in steps).
      c_width: scalar float32, Fermi width (in steps).
    Returns:
      (obj_num,) float32 objective weights.
    """
    obj_num = c_start.shape[0]
    n_pad = pl.cdiv(obj_num, _LANES) * _LANES
    pad = n_pad - obj_num

    # Hoisted, data-independent scalar: 1/(1+exp(x)) == sigmoid(-x).
    x = (jnp.asarray(step, jnp.float32) - jnp.asarray(c_mean, jnp.float32)) / \
        jnp.asarray(c_width, jnp.float32)
    fermi = jax.nn.sigmoid(-x).reshape((1,)).astype(jnp.float32)

    # Merge start/end into a single lane-major slab -> one VMEM DMA.
    start_p = jnp.pad(c_start.astype(jnp.float32), (0, pad))
    end_p = jnp.pad(c_end.astype(jnp.float32), (0, pad))
    se = jnp.stack([start_p, end_p], axis=0)            # (2, n_pad)

    out = pl.pallas_call(
        _schedule_kernel,
        out_shape=jax.ShapeDtypeStruct((1, n_pad), jnp.float32),
        in_specs=[
            pl.BlockSpec(memory_space=pltpu.MemorySpace.SMEM),  # fermi scalar
            pl.BlockSpec((2, n_pad), lambda: (0, 0)),           # [start; end]
        ],
        out_specs=pl.BlockSpec((1, n_pad), lambda: (0, 0)),
    )(fermi, se)

    return out[0, :obj_num]


if __name__ == "__main__":
    # Deterministic synthetic "training_hyperparams" (shapes from the module).
    obj_num = 4
    key = jax.random.PRNGKey(0)
    k1, k2 = jax.random.split(key)
    c_start = jax.random.uniform(k1, (obj_num,), dtype=jnp.float32)   # C_START
    c_end = jax.random.uniform(k2, (obj_num,), dtype=jnp.float32)     # C_END
    c_mean = jnp.float32(100.0)                                       # C_MEAN
    c_width = jnp.float32(25.0)                                       # C_WIDTH

    # First step.
    step = jnp.float32(80.0)
    weights = weight_scheduler_forward(step, c_start, c_end, c_mean, c_width)
    jax.block_until_ready(weights)
    ref = c_end + (c_start - c_end) / (1.0 + jnp.exp((step - c_mean) / c_width))
    assert jnp.allclose(weights, ref, atol=1e-6, rtol=1e-6)

    # Second step value: exercises the traced-step path (no retrace) and the
    # schedule actually moving toward c_end.
    step2 = jnp.float32(150.0)
    w2 = weight_scheduler_forward(step2, c_start, c_end, c_mean, c_width)
    jax.block_until_ready(w2)
    ref2 = c_end + (c_start - c_end) / (1.0 + jnp.exp((step2 - c_mean) / c_width))
    assert jnp.allclose(w2, ref2, atol=1e-6, rtol=1e-6)

    print("KERNEL_OK")
</pallas_src>

<mosaic_0001>
module attributes {stable_mosaic.version = 11 : i64} {
  func.func @_schedule_kernel(%arg0: memref<1xf32, #tpu.memory_space<smem>>, %arg1: memref<2x128xf32, #tpu.memory_space<vmem>>, %arg2: memref<1x128xf32, #tpu.memory_space<vmem>>) attributes {dimension_semantics = [], scalar_prefetch = 0 : i64, scratch_operands = 0 : i64, tpu.core_type = #tpu.core_type<tc>} {
    %c0 = arith.constant 0 : index
    %0 = memref.load %arg0[%c0] : memref<1xf32, #tpu.memory_space<smem>>
    %c0_0 = arith.constant 0 : index
    %c0_1 = arith.constant 0 : index
    %1 = vector.load %arg1[%c0_0, %c0_1] : memref<2x128xf32, #tpu.memory_space<vmem>>, vector<1x128xf32>
    %c1 = arith.constant 1 : index
    %c0_2 = arith.constant 0 : index
    %2 = vector.load %arg1[%c1, %c0_2] : memref<2x128xf32, #tpu.memory_space<vmem>>, vector<1x128xf32>
    %3 = arith.subf %1, %2 : vector<1x128xf32>
    %4 = vector.broadcast %0 : f32 to vector<1x128xf32>
    %5 = arith.mulf %3, %4 : vector<1x128xf32>
    %6 = arith.addf %2, %5 : vector<1x128xf32>
    %c0_3 = arith.constant 0 : index
    %c0_4 = arith.constant 0 : index
    %7 = vector.load %arg2[%c0_3, %c0_4] : memref<1x128xf32, #tpu.memory_space<vmem>>, vector<1x128xf32>
    tpu.vector_store %arg2[%c0_3, %c0_4], %6 {strides = array<i32>} : memref<1x128xf32, #tpu.memory_space<vmem>>, vector<1x128xf32>,
    return
  }
}

</mosaic_0001>

<bundles_post_ra>
// kernel: weight_scheduler_forward.1
= control target key start
LH: loop header
LB: loop body
LE: loop exit
PB: predicated region body
PF: predicated region fallthrough
CT: control target
= control target key end

     0   :  { %s51_s0 = inlined_call_operand.<no memory space> [shape: f32[1], index: 0, kind: input, shape index: {}]   ;;  %s52_s1 = inlined_call_operand.vmem [shape: f32[2,128], index: 1, kind: input, shape index: {}]   ;;  %s53_s2 = inlined_call_operand.vmem [shape: f32[1,128], index: 2, kind: output, shape index: {}]  }
   0x1   :  { %v13_v0 = vld [vmem:[%s52_s1] sm:$0x1]  ;;  %v14_v1 = vld [vmem:[%s52_s1 + $0x1] sm:$0x1]  ;;  %v16_v2 = vstv %s51_s0 }
   0x2   :  { %v15_v3 = vsub.f32 %v13_v0, %v14_v1 }
   0x4   :  { %v17_v4 = vmul.f32 %v16_v2, %v15_v3 }
   0x6   :  { %v18_v5 = vadd.f32 %v17_v4, %v14_v1 }
   0x8   :  { %19 = vst [vmem:[%s53_s2] sm:$0x1] %v18_v5 }

</bundles_post_ra>
